<compile_context>
chip_gen: v6e
topology: v6e:2x2x1
jax: 0.10.0
libtpu: 0.0.40
codegen_flags: <defaults>
</compile_context>

<pallas_src>
import math
from functools import partial

import numpy as np
import jax
import jax.numpy as jnp
from jax.experimental import pallas as pl
from jax.experimental.pallas import tpu as pltpu

# ----------------------------- small config ---------------------------------
# (small-shape stand-in for ViT(img_size=224, patch_size=16, embed_dim=768, ...))
# NOTE: EMBED=32 (<128 lanes) forces masked partial stores; tiling conclusions here
# do NOT transfer to the production 768-dim model - validate there separately.
IMG = 16          # image H == W
PATCH = 4         # patch size
IN_CHANS = 3      # _normalization hard-codes 3-channel mean/std
EMBED = 32        # embed_dim
DEPTH = 3         # number of blocks
NUM_HEADS = 4
MLP_RATIO = 4.0
INTERVAL = 3      # blocks with (i+1) % INTERVAL != 0 use window attention
WIN = 2           # window size for window blocks (tiny stand-in for (14, 14))
LN_EPS = 1e-6

# MXU input dtype: bf16 is native on all generations; accumulation stays f32 via
# preferred_element_type in every dot/einsum below.  Weights are staged in this
# dtype in HBM (param prep), activations are cast in-kernel right before the dot.
MXU_DTYPE = jnp.bfloat16

# Matmul tiles (512 on v6e/v7x with bf16, min'd with the actual M/N so the toy
# shapes become a single lane-dense block with no padding).
DEFAULT_BLK_M = 512
DEFAULT_BLK_N = 512


def _round_up(x, m):
    return (x + m - 1) // m * m


# ------------------------- hardware introspection ----------------------------
def _detect_num_cores():
    """Best-effort TensorCore count (v7x megacore).  Falls back to 1."""
    try:
        info = pltpu.get_tpu_info()
        for name in ("num_cores", "core_count", "tensorcore_count", "num_tensorcores"):
            v = getattr(info, name, None)
            if isinstance(v, int) and v >= 1:
                return v
    except Exception:
        pass
    return 1


_NUM_CORES = _detect_num_cores()


def _vmem_limit(tile_bytes):
    """Scoped-VMEM limit: double-buffered tiles + margin, never below 32 MiB.
    TODO(synk): at production tile sizes re-derive per generation (keep <= ~48 MiB
    of v7x's 64 MiB physical VMEM)."""
    need = 2 * int(tile_bytes) + (1 << 20)
    return int(max(need, 32 << 20))


# ----------------------------- sincos pos embed ------------------------------
def to_2tuple(x):
    return tuple(x) if isinstance(x, (tuple, list)) else (x, x)


def get_1d_sincos_pos_embed_from_grid(embed_dim, pos):
    assert embed_dim % 2 == 0
    omega = np.arange(embed_dim // 2, dtype=np.float64)
    omega /= embed_dim / 2.0
    omega = 1.0 / 10000 ** omega
    pos = pos.reshape(-1)
    out = np.einsum('m,d->md', pos, omega)
    return np.concatenate([np.sin(out), np.cos(out)], axis=1)


def get_2d_sincos_pos_embed_from_grid(embed_dim, grid):
    assert embed_dim % 2 == 0
    emb_h = get_1d_sincos_pos_embed_from_grid(embed_dim // 2, grid[0])
    emb_w = get_1d_sincos_pos_embed_from_grid(embed_dim // 2, grid[1])
    return np.concatenate([emb_h, emb_w], axis=1)


def get_2d_sincos_pos_embed(embed_dim, grid_size, cls_token=False):
    grid_size = to_2tuple(grid_size)
    grid_h = np.arange(grid_size[0], dtype=np.float32)
    grid_w = np.arange(grid_size[1], dtype=np.float32)
    grid = np.meshgrid(grid_w, grid_h)
    grid = np.stack(grid, axis=0).reshape([2, 1, grid_size[0], grid_size[1]])
    pos_embed = get_2d_sincos_pos_embed_from_grid(embed_dim, grid)
    if cls_token:
        pos_embed = np.concatenate([np.zeros([1, embed_dim]), pos_embed], axis=0)
    return pos_embed


# --------------------------- exact-erf GELU helper ----------------------------
def _erf_lowering_available():
    """Probe whether Mosaic can lower lax.erf (used for the exact nn.GELU)."""
    def k(x_ref, o_ref):
        o_ref[...] = jax.lax.erf(x_ref[...])
    try:
        y = pl.pallas_call(k, out_shape=jax.ShapeDtypeStruct((8, 128), jnp.float32))(
            jnp.zeros((8, 128), jnp.float32))
        jax.block_until_ready(y)
        return True
    except Exception:
        return False


_ERF_OK = _erf_lowering_available()
_SQRT_HALF = 0.7071067811865476


def _gelu_exact(x):
    """Exact-erf GELU (nn.GELU default), computed in f32 inside the kernel."""
    z = x * _SQRT_HALF
    if _ERF_OK:
        return 0.5 * x * (1.0 + jax.lax.erf(z))
    # TODO(synk): Mosaic erf lowering unavailable on this build -> Abramowitz &
    # Stegun 7.1.26 erf approximation (|abs err| < 1.5e-7, ~f32 rounding level).
    a = jnp.abs(z)
    t = 1.0 / (1.0 + 0.3275911 * a)
    poly = t * (0.254829592 + t * (-0.284496736 + t * (1.421413741
                + t * (-1.453152027 + t * 1.061405429))))
    erf_a = 1.0 - poly * jnp.exp(-a * a)
    erf_z = jnp.where(z >= 0.0, erf_a, -erf_a)
    return 0.5 * x * (1.0 + erf_z)


# ------------------------------ Pallas kernels --------------------------------
def _matmul_kernel(*refs, activation, has_residual, fuse_ln):
    """x @ w + b with optional fused LayerNorm on x, GELU on y, residual on y."""
    idx = 0
    x_ref = refs[idx]; idx += 1
    if fuse_ln:
        g_ref, bln_ref = refs[idx], refs[idx + 1]; idx += 2
    if has_residual:
        res_ref = refs[idx]; idx += 1
    w_ref, b_ref, o_ref = refs[idx], refs[idx + 1], refs[idx + 2]

    x = x_ref[...]                                   # f32
    if fuse_ln:                                      # LN in f32 (eps=1e-6, biased var)
        mu = jnp.mean(x, axis=-1, keepdims=True)
        xc = x - mu
        var = jnp.mean(xc * xc, axis=-1, keepdims=True)
        x = xc * jax.lax.rsqrt(var + LN_EPS) * g_ref[...] + bln_ref[...]
    y = jnp.dot(x.astype(MXU_DTYPE), w_ref[...],     # weights pre-staged in MXU_DTYPE
                preferred_element_type=jnp.float32) + b_ref[...]
    if activation == "gelu":
        y = _gelu_exact(y)
    if has_residual:
        y = y + res_ref[...]
    o_ref[...] = y


def _pick_blk_n(N, target):
    """Largest divisor of N <= target (avoids a silent full-width weight block)."""
    if N <= target:
        return N
    best = 1
    for d in range(target, 0, -1):
        if N % d == 0:
            best = d
            break
    # TODO(synk): pad N to a blk_n multiple instead when N has no divisor >= 128.
    return best if best >= 128 else N


def _pick_blk_m(M, target, n_col_tiles):
    blk = min(target, _round_up(M, 8))
    # v7x (2 TCs): ensure >= 2 grid programs so both cores get work; on single-core
    # chips keep the single bigger tile (forcing a split only adds per-step overhead).
    if _NUM_CORES >= 2 and n_col_tiles == 1 and M > 8:
        half = _round_up(-(-M // 2), 8)
        blk = min(blk, half)
    return blk


def _launch_matmul(x, w, b, *, ln=None, residual=None, activation=None,
                   blk_m=DEFAULT_BLK_M, blk_n=DEFAULT_BLK_N):
    """(M, K) @ (K, N) + b; optional fused LN on x, GELU on y, residual add on y.

    Grid is (N_tiles, M_tiles) with M innermost -> the (K, blk_n) weight block index
    is constant over the inner axis (weight-stationary), so it is DMA'd once per
    column tile instead of once per M tile."""
    M, K = x.shape
    _, N = w.shape
    blk_n = _pick_blk_n(N, blk_n)
    n_col = N // blk_n
    blk_m = _pick_blk_m(M, blk_m, n_col)
    Mp = _round_up(M, blk_m)
    if Mp != M:                                      # only pad when not tile-aligned
        x = jnp.pad(x, ((0, Mp - M), (0, 0)))
        if residual is not None:
            residual = jnp.pad(residual, ((0, Mp - M), (0, 0)))

    args = [x]
    in_specs = [pl.BlockSpec((blk_m, K), lambda j, i: (i, 0))]
    tile_bytes = blk_m * K * 4
    if ln is not None:
        g, bln = ln
        args += [g.reshape(1, K), bln.reshape(1, K)]
        in_specs += [pl.BlockSpec((1, K), lambda j, i: (0, 0)),
                     pl.BlockSpec((1, K), lambda j, i: (0, 0))]
        tile_bytes += 2 * K * 4
    if residual is not None:
        args.append(residual)
        in_specs.append(pl.BlockSpec((blk_m, blk_n), lambda j, i: (i, j)))
        tile_bytes += blk_m * blk_n * 4
    args += [w, b.reshape(1, N)]
    in_specs += [pl.BlockSpec((K, blk_n), lambda j, i: (0, j)),
                 pl.BlockSpec((1, blk_n), lambda j, i: (0, j))]
    tile_bytes += K * blk_n * w.dtype.itemsize + blk_n * 4 + blk_m * blk_n * 4

    kern = partial(_matmul_kernel, activation=activation,
                   has_residual=residual is not None, fuse_ln=ln is not None)
    out = pl.pallas_call(
        kern,
        out_shape=jax.ShapeDtypeStruct((Mp, N), jnp.float32),
        grid=(n_col, Mp // blk_m),
        in_specs=in_specs,
        out_specs=pl.BlockSpec((blk_m, blk_n), lambda j, i: (i, j)),
        compiler_params=pltpu.CompilerParams(
            dimension_semantics=("parallel", "parallel"),
            vmem_limit_bytes=_vmem_limit(tile_bytes)),
    )(*args)
    return out[:M] if Mp != M else out


def matmul_bias(x, w, b, activation=None, residual=None):
    """Linear layer on the MXU, optional fused GELU / residual add."""
    return _launch_matmul(x, w, b, activation=activation, residual=residual)


def ln_matmul_bias(x, g, bln, w, b, activation=None, residual=None):
    """LayerNorm(x) fused with the consumer Linear (+ optional GELU / residual)."""
    return _launch_matmul(x, w, b, ln=(g, bln), activation=activation,
                          residual=residual)


def _layernorm_kernel(x_ref, g_ref, b_ref, o_ref):
    x = x_ref[...]
    mu = jnp.mean(x, axis=-1, keepdims=True)
    xc = x - mu
    var = jnp.mean(xc * xc, axis=-1, keepdims=True)
    o_ref[...] = xc * jax.lax.rsqrt(var + LN_EPS) * g_ref[...] + b_ref[...]


def layernorm(x2d, g, b, blk_m=512):
    """Row-tiled standalone LayerNorm (where fusing into a matmul is unsafe)."""
    M, C = x2d.shape
    blk_m = _pick_blk_m(M, blk_m, 1)
    Mp = _round_up(M, blk_m)
    if Mp != M:
        x2d = jnp.pad(x2d, ((0, Mp - M), (0, 0)))
    tile_bytes = 2 * blk_m * C * 4 + 2 * C * 4
    out = pl.pallas_call(
        _layernorm_kernel,
        out_shape=jax.ShapeDtypeStruct((Mp, C), jnp.float32),
        grid=(Mp // blk_m,),
        in_specs=[pl.BlockSpec((blk_m, C), lambda i: (i, 0)),
                  pl.BlockSpec((1, C), lambda i: (0, 0)),
                  pl.BlockSpec((1, C), lambda i: (0, 0))],
        out_specs=pl.BlockSpec((blk_m, C), lambda i: (i, 0)),
        compiler_params=pltpu.CompilerParams(
            dimension_semantics=("parallel",),
            vmem_limit_bytes=_vmem_limit(tile_bytes)),
    )(x2d, g.reshape(1, C), b.reshape(1, C))
    return out[:M] if Mp != M else out


def _attn_kernel(qkv_ref, o_ref, *, num_heads, zero_nonfinite):
    """All heads of a group of windows/images.  The attention scale is pre-folded
    into the q columns of qkv_w; each head reads its q/k/v slice straight from the
    qkv ref and stores its output directly into its slice of o_ref (no concat)."""
    C = o_ref.shape[-1]
    hd = C // num_heads
    for h in range(num_heads):
        q = qkv_ref[:, :, h * hd:(h + 1) * hd].astype(MXU_DTYPE)
        k = qkv_ref[:, :, C + h * hd:C + (h + 1) * hd].astype(MXU_DTYPE)
        v = qkv_ref[:, :, 2 * C + h * hd:2 * C + (h + 1) * hd].astype(MXU_DTYPE)
        s = jnp.einsum('gnd,gmd->gnm', q, k, preferred_element_type=jnp.float32)
        s_max = jnp.max(s, axis=-1, keepdims=True)
        e = jnp.exp(s - s_max)
        p = e * pl.reciprocal(jnp.sum(e, axis=-1, keepdims=True), approx=True)
        if zero_nonfinite:   # WindowAttention: attn.masked_fill(isinf | isnan, 0)
            p = jnp.where(jnp.isnan(p) | jnp.isinf(p), 0.0, p)
        o_ref[:, :, h * hd:(h + 1) * hd] = jnp.einsum(
            'gnm,gmd->gnd', p.astype(MXU_DTYPE), v,
            preferred_element_type=jnp.float32)


def attention_core(qkv, num_heads, zero_nonfinite):
    """qkv: (BW, N, 3C) -> (BW, N, C) attention output (heads already merged)."""
    BW, N, C3 = qkv.shape
    C = C3 // 3
    # ~8 MiB VMEM group budget: double-buffered qkv in + out blocks plus per-head
    # (N, N) score/exp/prob intermediates (one head live at a time).
    per_group_bytes = 4 * (2 * (N * C3 + N * C) + 3 * N * N + 2 * N * C)
    budget = 8 << 20
    cap = max(1, budget // max(per_group_bytes, 1))
    if _NUM_CORES >= 2 and BW >= 2:
        cap = min(cap, BW // 2)        # keep >= 2 programs so both v7x TCs get work
    G = 1
    for d in range(1, BW + 1):
        if BW % d == 0 and d <= cap:
            G = d
    # TODO(synk): for production-size global blocks (N in the thousands) switch to a
    # flash-style online-softmax kernel so the (N, N) score matrix never materializes.
    kern = partial(_attn_kernel, num_heads=num_heads, zero_nonfinite=zero_nonfinite)
    tile_bytes = G * (N * C3 * 4 + N * C * 4)
    return pl.pallas_call(
        kern,
        out_shape=jax.ShapeDtypeStruct((BW, N, C), jnp.float32),
        grid=(BW // G,),
        in_specs=[pl.BlockSpec((G, N, C3), lambda i: (i, 0, 0))],
        out_specs=pl.BlockSpec((G, N, C), lambda i: (i, 0, 0)),
        compiler_params=pltpu.CompilerParams(
            dimension_semantics=("parallel",),
            vmem_limit_bytes=_vmem_limit(tile_bytes)),
    )(qkv)


# ------------------------------ model pieces ----------------------------------
def patch_embed(x, params, psize):
    """Conv2d(kernel=stride=p) as im2col + matmul; pixel normalization pre-folded
    into the weights, and the abs pos_embed fused in as the matmul residual."""
    B, C, H, W = x.shape
    Hp, Wp = H // psize, W // psize
    patches = x.reshape(B, C, Hp, psize, Wp, psize).transpose(0, 2, 4, 1, 3, 5)
    patches = patches.reshape(B * Hp * Wp, C * psize * psize)
    E = params['patch_b_fold'].shape[0]
    pos = jnp.broadcast_to(params['pos_embed'][0], (B, Hp * Wp, E))
    out = matmul_bias(patches, params['patch_w_mat'], params['patch_b_fold'],
                      residual=pos.reshape(B * Hp * Wp, E))
    return out.reshape(B, Hp * Wp, E), (Hp, Wp)


def mha(x3, p, num_heads, zero_nonfinite, ln_params=None, residual3=None):
    """Multi-head self attention on (B_, N, C) tokens.  If ln_params is given,
    norm1 is fused into the qkv matmul; if residual3 is given, the residual add is
    fused into the proj matmul."""
    B_, N, C = x3.shape
    x2 = x3.reshape(B_ * N, C)
    if ln_params is not None:
        qkv = ln_matmul_bias(x2, ln_params[0], ln_params[1], p['qkv_w'], p['qkv_b'])
    else:
        qkv = matmul_bias(x2, p['qkv_w'], p['qkv_b'])
    o = attention_core(qkv.reshape(B_, N, 3 * C), num_heads, zero_nonfinite)
    res2 = residual3.reshape(B_ * N, C) if residual3 is not None else None
    o = matmul_bias(o.reshape(B_ * N, C), p['proj_w'], p['proj_b'], residual=res2)
    return o.reshape(B_, N, C)


def window_attention_residual(x, H, W, p, num_heads, win, ln_params):
    """Returns x + WindowAttention(norm1(x)).  When no padding is needed, norm1 is
    fused into the qkv matmul and the residual (the window-permuted pre-norm x) is
    fused into the proj matmul; window partition/reverse commute with the add."""
    B, N, C = x.shape
    pad_r = (win - W % win) % win
    pad_b = (win - H % win) % win
    padded = bool(pad_r or pad_b)
    if padded:
        # Padded rows must enter qkv as exact zeros (reference pads *after* norm1),
        # so run the row-tiled LN first and keep the residual add standalone.
        src = layernorm(x.reshape(B * N, C), ln_params[0], ln_params[1]).reshape(B, N, C)
        ln_for_mha = None
    else:
        src = x
        ln_for_mha = ln_params
    xi = src.reshape(B, H, W, C)
    if padded:
        xi = jnp.pad(xi, ((0, 0), (0, pad_b), (0, pad_r), (0, 0)))
    Hp_, Wp_ = H + pad_b, W + pad_r
    xw = xi.reshape(B, Hp_ // win, win, Wp_ // win, win, C)
    xw = xw.transpose(0, 1, 3, 2, 4, 5).reshape(-1, win * win, C)       # partition
    res = None if padded else xw          # window-permuted pre-norm x == residual
    aw = mha(xw, p, num_heads, zero_nonfinite=True, ln_params=ln_for_mha,
             residual3=res)
    aw = aw.reshape(B, Hp_ // win, Wp_ // win, win, win, C)
    aw = aw.transpose(0, 1, 3, 2, 4, 5).reshape(B, Hp_, Wp_, C)         # reverse
    if padded:
        aw = aw[:, :H, :W, :]
    a = aw.reshape(B, H * W, C)
    if padded:
        # TODO(synk): padded-window path keeps a standalone residual add (rows are
        # permuted/truncated relative to the proj output, so it cannot be fused).
        a = x + a
    return a


def block_forward(x, H, W, p, num_heads):
    B, N, C = x.shape
    ln1 = (p['norm1_g'], p['norm1_b'])
    if p['is_window']:
        x = window_attention_residual(x, H, W, p, num_heads, p['win'], ln1)
    else:
        x = mha(x, p, num_heads, zero_nonfinite=False, ln_params=ln1, residual3=x)
    # MLP: norm2 + fc1 + bias + exact-erf GELU in one kernel, fc2 fused with the
    # residual add -> no standalone elementwise HBM pass for either residual.
    x2 = x.reshape(B * N, C)
    h = ln_matmul_bias(x2, p['norm2_g'], p['norm2_b'],
                       p['fc1_w'], p['fc1_b'], activation="gelu")
    x2 = matmul_bias(h, p['fc2_w'], p['fc2_b'], residual=x2)
    return x2.reshape(B, N, C)


def vit_forward(params, x):
    """ViT.forward (inference) on input_var['image'] -> backbone_output.

    x: (B, 3, H, W) float32 NCHW.  Returns (B, embed_dim, Hp, Wp).
    """
    B = x.shape[0]
    # _normalization is folded into the patch-embed weights; pos_embed is fused in
    # as the patch-embed matmul residual (use_abs_pos_emb, test_pos_mode=False).
    tok, (Hp, Wp) = patch_embed(x, params, PATCH)
    # ln_pre is Identity (pre_ln=False)
    for bp in params['blocks']:
        tok = block_forward(tok, Hp, Wp, bp, NUM_HEADS)
    tok2 = layernorm(tok.reshape(-1, EMBED), params['norm_g'], params['norm_b'])
    tok = tok2.reshape(tok.shape)                  # ending_norm=True
    return tok.transpose(0, 2, 1).reshape(B, EMBED, Hp, Wp)


# ------------------------------ param init / prep ------------------------------
def init_params(key):
    keys = iter(jax.random.split(key, 128))

    def tn(shape, std=0.02):
        return (std * jax.random.truncated_normal(next(keys), -2.0, 2.0, shape)
                ).astype(jnp.float32)

    E, hidden = EMBED, int(EMBED * MLP_RATIO)
    grid = IMG // PATCH
    params = {
        'pix_mean': jnp.array([123.675, 116.28, 103.53], jnp.float32),
        'pix_std': jnp.array([58.395, 57.12, 57.375], jnp.float32),
        'patch_w': tn((E, IN_CHANS, PATCH, PATCH)),
        'patch_b': jnp.zeros((E,), jnp.float32),
        'pos_embed': jnp.asarray(
            get_2d_sincos_pos_embed(E, (grid, grid), cls_token=False),
            jnp.float32)[None],
        'norm_g': jnp.ones((E,), jnp.float32),
        'norm_b': jnp.zeros((E,), jnp.float32),
        'blocks': [],
    }
    for i in range(DEPTH):
        is_window = ((i + 1) % INTERVAL != 0)      # window=True in config
        rescale = 1.0 / math.sqrt(2.0 * (i + 1))   # fix_init_weight
        bp = {
            'norm1_g': jnp.ones((E,), jnp.float32),
            'norm1_b': jnp.zeros((E,), jnp.float32),
            'qkv_w': tn((3 * E, E)).T,             # torch (out,in) -> stored (in,out)
            'qkv_b': jnp.zeros((3 * E,), jnp.float32),   # qkv_bias=False
            'proj_w': (tn((E, E)) * rescale).T,
            'proj_b': jnp.zeros((E,), jnp.float32),
            'norm2_g': jnp.ones((E,), jnp.float32),
            'norm2_b': jnp.zeros((E,), jnp.float32),
            'fc1_w': tn((hidden, E)).T,
            'fc1_b': jnp.zeros((hidden,), jnp.float32),
            'fc2_w': (tn((E, hidden)) * rescale).T,
            'fc2_b': jnp.zeros((E,), jnp.float32),
            'is_window': is_window,
            'win': WIN if is_window else grid,
        }
        params['blocks'].append(bp)
    return params


def prepare_params(params):
    """Inference-time prep: fold pixel normalization into the patch-embed conv,
    fold the attention scale into the q columns of qkv, and stage every matmul
    weight in MXU_DTYPE (bf16) in HBM.  Biases / LN params stay f32."""
    p = dict(params)
    E = params['patch_w'].shape[0]
    C = params['patch_w'].shape[1]
    inv_std = 1.0 / params['pix_std']
    w_fold = params['patch_w'] * inv_std.reshape(1, C, 1, 1)
    b_fold = params['patch_b'] - jnp.sum(
        w_fold * params['pix_mean'].reshape(1, C, 1, 1), axis=(1, 2, 3))
    p['patch_w_mat'] = w_fold.reshape(E, -1).T.astype(MXU_DTYPE)
    p['patch_b_fold'] = b_fold

    scale = (E // NUM_HEADS) ** -0.5
    qscale = jnp.concatenate(
        [jnp.full((E,), scale, jnp.float32), jnp.ones((2 * E,), jnp.float32)])
    blocks = []
    for bp in params['blocks']:
        nbp = dict(bp)
        nbp['qkv_w'] = (bp['qkv_w'] * qscale[None, :]).astype(MXU_DTYPE)
        nbp['qkv_b'] = bp['qkv_b'] * qscale
        nbp['proj_w'] = bp['proj_w'].astype(MXU_DTYPE)
        nbp['fc1_w'] = bp['fc1_w'].astype(MXU_DTYPE)
        nbp['fc2_w'] = bp['fc2_w'].astype(MXU_DTYPE)
        blocks.append(nbp)
    p['blocks'] = blocks
    return p


# ---------------------------------- main ---------------------------------------
if __name__ == "__main__":
    kp, kx = jax.random.split(jax.random.PRNGKey(0))
    params = prepare_params(init_params(kp))
    x = jax.random.uniform(kx, (2, IN_CHANS, IMG, IMG), jnp.float32) * 255.0
    out = vit_forward(params, x)
    out = jax.block_until_ready(out)
    assert out.shape == (2, EMBED, IMG // PATCH, IMG // PATCH), out.shape
    assert bool(jnp.all(jnp.isfinite(out)))
    print("KERNEL_OK")
</pallas_src>

<mosaic_0001>
module attributes {stable_mosaic.version = 11 : i64} {
  func.func @k(%arg0: memref<8x128xf32, #tpu.memory_space<vmem>>, %arg1: memref<8x128xf32, #tpu.memory_space<vmem>>) attributes {dimension_semantics = [], scalar_prefetch = 0 : i64, scratch_operands = 0 : i64, tpu.core_type = #tpu.core_type<tc>} {
    %c0 = arith.constant 0 : index
    %c0_0 = arith.constant 0 : index
    %0 = vector.load %arg0[%c0, %c0_0] : memref<8x128xf32, #tpu.memory_space<vmem>>, vector<8x128xf32>
    %1 = math.erf %0 : vector<8x128xf32>
    %c0_1 = arith.constant 0 : index
    %c0_2 = arith.constant 0 : index
    %2 = vector.load %arg1[%c0_1, %c0_2] : memref<8x128xf32, #tpu.memory_space<vmem>>, vector<8x128xf32>
    tpu.vector_store %arg1[%c0_1, %c0_2], %1 {strides = array<i32>} : memref<8x128xf32, #tpu.memory_space<vmem>>, vector<8x128xf32>,
    return
  }
}

module attributes {stable_mosaic.version = 11 : i64} {
  func.func @_matmul_kernel(%arg0: i32, %arg1: i32, %arg2: memref<32x48xf32, #tpu.memory_space<vmem>>, %arg3: memref<32x32xf32, #tpu.memory_space<vmem>>, %arg4: memref<48x32xbf16, #tpu.memory_space<vmem>>, %arg5: memref<1x32xf32, #tpu.memory_space<vmem>>, %arg6: memref<32x32xf32, #tpu.memory_space<vmem>>) attributes {dimension_semantics = [#tpu.dimension_semantics<parallel>, #tpu.dimension_semantics<parallel>], iteration_bounds = array<i64: 1, 1>, scalar_prefetch = 0 : i64, scratch_operands = 0 : i64, tpu.core_type = #tpu.core_type<tc>, window_params = [{transform_indices = @transform_0, window_bounds = array<i64: 32, 48>}, {transform_indices = @transform_1, window_bounds = array<i64: 32, 32>}, {transform_indices = @transform_2, window_bounds = array<i64: 48, 32>}, {transform_indices = @transform_3, window_bounds = array<i64: 1, 32>}, {transform_indices = @transform_4, window_bounds = array<i64: 32, 32>}]} {
    %c0 = arith.constant 0 : index
    %c0_0 = arith.constant 0 : index
    %0 = vector.load %arg2[%c0, %c0_0] : memref<32x48xf32, #tpu.memory_space<vmem>>, vector<32x48xf32>
    %1 = arith.truncf %0 : vector<32x48xf32> to vector<32x48xbf16>
    %c0_1 = arith.constant 0 : index
    %c0_2 = arith.constant 0 : index
    %2 = vector.load %arg4[%c0_1, %c0_2] : memref<48x32xbf16, #tpu.memory_space<vmem>>, vector<48x32xbf16>
    %cst = arith.constant dense<0.000000e+00> : vector<32x32xf32>
    %3 = tpu.matmul %1, %2, %cst {dimension_numbers = #tpu.dot_dimension_numbers<[1], [0], [0], [1], [0, 0, 1, 1], [], []>} : vector<32x48xbf16>, vector<48x32xbf16>, vector<32x32xf32> -> vector<32x32xf32>
    %c0_3 = arith.constant 0 : index
    %c0_4 = arith.constant 0 : index
    %4 = vector.load %arg5[%c0_3, %c0_4] : memref<1x32xf32, #tpu.memory_space<vmem>>, vector<1x32xf32>
    %5 = vector.broadcast %4 : vector<1x32xf32> to vector<32x32xf32>
    %6 = arith.addf %3, %5 : vector<32x32xf32>
    %c0_5 = arith.constant 0 : index
    %c0_6 = arith.constant 0 : index
    %7 = vector.load %arg3[%c0_5, %c0_6] : memref<32x32xf32, #tpu.memory_space<vmem>>, vector<32x32xf32>
    %8 = arith.addf %6, %7 : vector<32x32xf32>
    %c0_7 = arith.constant 0 : index
    %c0_8 = arith.constant 0 : index
    %9 = vector.load %arg6[%c0_7, %c0_8] : memref<32x32xf32, #tpu.memory_space<vmem>>, vector<32x32xf32>
    tpu.vector_store %arg6[%c0_7, %c0_8], %8 {strides = array<i32>} : memref<32x32xf32, #tpu.memory_space<vmem>>, vector<32x32xf32>,
    return
  }
  func.func @transform_0(%arg0: i32, %arg1: i32) -> (i32, i32) {
    %c0_i32 = arith.constant 0 : i32
    %c0_i32_0 = arith.constant 0 : i32
    return %arg1, %c0_i32 : i32, i32
  }
  func.func @transform_1(%arg0: i32, %arg1: i32) -> (i32, i32) {
    %c0_i32 = arith.constant 0 : i32
    return %arg1, %arg0 : i32, i32
  }
  func.func @transform_2(%arg0: i32, %arg1: i32) -> (i32, i32) {
    %c0_i32 = arith.constant 0 : i32
    %c0_i32_0 = arith.constant 0 : i32
    return %c0_i32, %arg0 : i32, i32
  }
  func.func @transform_3(%arg0: i32, %arg1: i32) -> (i32, i32) {
    %c0_i32 = arith.constant 0 : i32
    %c0_i32_0 = arith.constant 0 : i32
    return %c0_i32, %arg0 : i32, i32
  }
  func.func @transform_4(%arg0: i32, %arg1: i32) -> (i32, i32) {
    %c0_i32 = arith.constant 0 : i32
    return %arg1, %arg0 : i32, i32
  }
}

</mosaic_0001>

<bundles_post_ra>
// kernel: tpu_custom_call.1
= control target key start
LH: loop header
LB: loop body
LE: loop exit
PB: predicated region body
PF: predicated region fallthrough
CT: control target
= control target key end

     0   :  { %6 = vsyncpa [#allocation3], 0  ;;  %s105_s0 = inlined_call_operand.hbm [shape: f32[8,128], index: 0, kind: input, shape index: {}]   ;;  %s106_s1 = inlined_call_operand.hbm [shape: f32[8,128], index: 1, kind: output, shape index: {}]  }
   0x1   :  { %7 = vsyncpa [#allocation4], 0  ;;  %s87_s6 = smov [#allocation2]  }
   0x2   :  { %s14_s7 = sshll.u32 %s87_s6, 4  ;;  %s15_s7 = int_to_ptr.vmem [resolvable:$true] %s14_s7 }
   0x3   :  { %s51_s8 = scalar_lea.vmem %s15_s7, 128  ;;  %p56_p1 = scmp.lt.s32.totalorder %s15_s7, %s15_s7 }
   0x4   :  { %p52_p0 = scmp.ne.s32.totalorder %s15_s7, %s51_s8  ;;  %p57_p2 = scmp.lt.s32.totalorder %s51_s8, %s51_s8 }
   0x6   :  { %p58_p3 = por %p57_p2, %p56_p1 }
   0x8   :  { %p59_p4 = pnand %p58_p3, %p52_p0 }
   0xa   :  { %62 = shalt.err (!%p59_p4)
}
   0xb   :  { %17 = dma.hbm_to_vmem [thread:$0]  %s105_s0, 128, %s15_s7, [#allocation3]  }
   0xc   :  { %83 = dma.done.wait [#allocation3], 128  }
   0xd   :  { %84 = vsyncadd [#allocation3], 4294967168  ;;  %v21_v0 = vld [vmem:[#allocation2] sm:$0xff]  ;;  %s88_s11 = smov [#allocation5]  }
   0xe   :  { %41 = verf.f32 %v21_v0  ;;  %s30_s12 = sshll.u32 %s88_s11, 4  ;;  %s31_s12 = int_to_ptr.vmem [resolvable:$true] %s30_s12 }
   0xf   :  { %s63_s13 = scalar_lea.vmem %s31_s12, 128  ;;  %p68_p6 = scmp.lt.s32.totalorder %s31_s12, %s31_s12 }
  0x10   :  { %p64_p5 = scmp.ne.s32.totalorder %s31_s12, %s63_s13  ;;  %p69_p7 = scmp.lt.s32.totalorder %s63_s13, %s63_s13 }
  0x12   :  { %p70_p8 = por %p69_p7, %p68_p6 }
  0x14   :  { %p71_p9 = pnand %p70_p8, %p64_p5 }
  0x1b   :  { %v42_v1 = vpop.eup %41 }
  0x1c   :  { %23 = vst [vmem:[#allocation5] sm:$0xff] %v42_v1 }
  0x1d   :  { %74 = shalt.err (!%p71_p9)
}
  0x1e   :  { %33 = dma.vmem_to_hbm [thread:$0]  %s31_s12, 128, %s106_s1, [#allocation4]  }
  0x1f   :  { %85 = dma.done.wait [#allocation4], 128  }
  0x20   :  { %86 = vsyncadd [#allocation4], 4294967168 }
  0x21   :  { %37 = vsyncpa [#allocation3], 1 }
  0x22   :  { %38 = vsyncpa [#allocation4], 1 }

// kernel: tpu_custom_call.1
= control target key start
LH: loop header
LB: loop body
LE: loop exit
PB: predicated region body
PF: predicated region fallthrough
CT: control target
= control target key end

     0   :  { %9 = vsyncpa [#allocation3], 0  ;;  %s297_s0 = inlined_call_operand.vmem [shape: f32[32,48], index: 0, kind: input, shape index: {}]   ;;  %s298_s1 = inlined_call_operand.hbm [shape: f32[32,32], index: 1, kind: input, shape index: {}]   ;;  %s299_s2 = inlined_call_operand.vmem [shape: bf16[48,32], index: 2, kind: input, shape index: {}]   ;;  %s300_s3 = inlined_call_operand.vmem [shape: f32[1,32], index: 3, kind: input, shape index: {}]   ;;  %s301_s4 = inlined_call_operand.hbm [shape: f32[32,32], index: 4, kind: output, shape index: {}]  }
   0x1   :  { %10 = vsyncpa [#allocation4], 0  ;;  %s228_s15 = smov [#allocation2]  }
   0x2   :  { %s18_s16 = sshll.u32 %s228_s15, 4  ;;  %s19_s16 = int_to_ptr.vmem [resolvable:$true] %s18_s16 }
   0x3   :  { %s192_s17 = scalar_lea.vmem %s19_s16, 512  ;;  %p197_p1 = scmp.lt.s32.totalorder %s19_s16, %s19_s16 }
   0x4   :  { %p193_p0 = scmp.ne.s32.totalorder %s19_s16, %s192_s17  ;;  %p198_p2 = scmp.lt.s32.totalorder %s192_s17, %s192_s17 }
   0x6   :  { %p199_p3 = por %p198_p2, %p197_p1 }
   0x8   :  { %p200_p4 = pnand %p199_p3, %p193_p0 }
   0xa   :  { %203 = shalt.err (!%p200_p4)
}
   0xb   :  { %s229_s18 = smov 128   ;;  %s230_s19 = smov 8  }
   0xc   :  { %24 = dma.hbm_to_vmem [thread:$0]  %s298_s1, 512, %s19_s16, [#allocation3], %s229_s18, %s229_s18, %s230_s19  }
   0xd   :  { %224 = dma.done.wait [#allocation3], 512  }
   0xe   :  { %225 = vsyncadd [#allocation3], 4294966784  ;;  %v181_v0 = vld [vmem:[%s299_s2 + $0x10] sm:$0xff]   ;;  %v182_v1 = vld [vmem:[%s299_s2 + $0x8] sm:$0xff]   ;;  %vm70_vm0 = vcmask 392192   ;;  %vm134_vm1 = vcmask 261120  }
   0xf   :  { %167 = vmatprep.subr.bf16.mxu0 %v181_v0  ;;  %v33_v2 = vld [vmem:[%s297_s0] sm:$0xff]  ;;  %v34_v3 = vld [vmem:[%s297_s0 + $0x8] sm:$0xff]  ;;  %v35_v6 = vld [vmem:[%s297_s0 + $0x10] sm:$0xff] }
  0x10   :  { %168 = vmatpush3.bf16.msra.mxu0 %v181_v0  ;;  %v183_v4 = vld [vmem:[%s299_s2] sm:$0xff]   ;;  %v37_v5 = vpack.c.bf16 %v34_v3, %v33_v2  ;;  %v36_v7 = vld [vmem:[%s297_s0 + $0x18] sm:$0xff]  ;;  %v128_v11 = vld [vmem:[#allocation2 + $0x10] sm:$0xff]  ;;  %s231_s0 = smov [#allocation5]  }
  0x11   :  { %169 = vmatprep.subr.bf16.mxu0 %v182_v1  ;;  %v38_v8 = vpack.c.bf16 %v36_v7, %v35_v6  ;;  %v156_v9 = vld [vmem:[%s300_s3] ss:$0 sm:$0xff]  ;;  %v129_v18 = vld [vmem:[#allocation2 + $0x18] sm:$0xff]  ;;  %v127_v22 = vld [vmem:[#allocation2 + $0x8] sm:$0xff]  ;;  %s144_s2 = sshll.u32 %s231_s0, 4  ;;  %s145_s2 = int_to_ptr.vmem [resolvable:$true] %s144_s2 }
  0x12   :  { %173 = vmatprep.mubr.msk.bf16.mxu0 %vm70_vm0, %v37_v5  ;;  %v126_v14 = vld [vmem:[#allocation2] sm:$0xff]  ;;  %s204_s3 = scalar_lea.vmem %s145_s2, 512  ;;  %p209_p6 = scmp.lt.s32.totalorder %s145_s2, %s145_s2 }
  0x13   :  { %p205_p5 = scmp.ne.s32.totalorder %s145_s2, %s204_s3  ;;  %p210_p7 = scmp.lt.s32.totalorder %s204_s3, %s204_s3 }
  0x14   :  { %170 = vmatpush3.bf16.msra.mxu0 %v182_v1 }
  0x15   :  { %171 = vmatprep.subr.bf16.mxu0 %v183_v4  ;;  %p211_p8 = por %p210_p7, %p209_p6 }
  0x17   :  { %p212_p9 = pnand %p211_p8, %p205_p5 }
  0x18   :  { %172 = vmatpush3.bf16.msra.mxu0 %v183_v4 }
  0x1b   :  { %174 = vmatmul.mubr.msk.bf16.vlgmr.msra.gmra.mxu0 %vm70_vm0, %v38_v8 }
  0xdb   :  { %v175_v10 = vpop.f32.mrf.mxu0 }
  0xdc   :  { %v120_v12 = vadd.f32 %v175_v10, %v156_v9 }
  0xdd   :  { %v111_v13 = vpop.f32.mrf.mxu0 }
  0xde   :  { %v132_v15 = vadd.f32 %v128_v11, %v120_v12  ;;  %v112_v16 = vadd.f32 %v156_v9, %v111_v13 }
  0xdf   :  { %v176_v17 = vpop.f32.mrf.mxu0 }
  0xe0   :  { %137 = vst.msk [vmem:[#allocation5 + $0x10] sm:$0xff] %vm134_vm1, %v132_v15  ;;  %v130_v19 = vadd.f32 %v126_v14, %v112_v16  ;;  %v123_v20 = vadd.f32 %v176_v17, %v156_v9 }
  0xe1   :  { %v114_v21 = vpop.f32.mrf.mxu0 }
  0xe2   :  { %135 = vst.msk [vmem:[#allocation5] sm:$0xff] %vm134_vm1, %v130_v19  ;;  %v133_v23 = vadd.f32 %v129_v18, %v123_v20  ;;  %v115_v24 = vadd.f32 %v156_v9, %v114_v21 }
  0xe4   :  { %138 = vst.msk [vmem:[#allocation5 + $0x18] sm:$0xff] %vm134_vm1, %v133_v23  ;;  %v131_v25 = vadd.f32 %v127_v22, %v115_v24 }
  0xe6   :  { %136 = vst.msk [vmem:[#allocation5 + $0x8] sm:$0xff] %vm134_vm1, %v131_v25 }
  0xe7   :  { %215 = shalt.err (!%p212_p9)
}
  0xe8   :  { %150 = dma.vmem_to_hbm [thread:$0]  %s145_s2, 512, %s301_s4, [#allocation4], %s229_s18, %s229_s18, %s230_s19  }
  0xe9   :  { %226 = dma.done.wait [#allocation4], 512  }
  0xea   :  { %227 = vsyncadd [#allocation4], 4294966784 }
  0xeb   :  { %154 = vsyncpa [#allocation3], 1 }
  0xec   :  { %155 = vsyncpa [#allocation4], 1 }

</bundles_post_ra>
